<compile_context>
chip_gen: v5e
topology: v5e:2x2
jax: 0.10.0
libtpu: 0.0.40
codegen_flags: <defaults>
</compile_context>

<pallas_src>
import functools
import warnings

import jax
import jax.numpy as jnp
from jax.experimental import pallas as pl
from jax.experimental.pallas import tpu as pltpu


# --------------------------------------------------------------------------- #
# Hardware queries (with conservative fallbacks so the script never hard-fails)
# --------------------------------------------------------------------------- #
def _vmem_capacity_bytes() -> int:
    try:
        return int(pltpu.get_tpu_info().vmem_capacity_bytes)
    except Exception:
        return 64 * 1024 * 1024  # conservative: v7x has the smallest VMEM


def _num_tensorcores() -> int:
    """TensorCores addressed by one Pallas program (for 'parallel' sharding)."""
    try:
        kind = jax.devices()[0].device_kind.lower().replace(" ", "")
    except Exception:
        return 1
    if "v5lite" in kind or "v5e" in kind or "v6" in kind:
        return 1  # single TensorCore per chip
    if "v4" in kind or "v5p" in kind or "7" in kind:
        return 2  # megacore / v7x: two TCs share one program
    return 1


def _round_up(x: int, m: int) -> int:
    return ((x + m - 1) // m) * m


# --------------------------------------------------------------------------- #
# Kernel body
# --------------------------------------------------------------------------- #
def _sgd_kernel(scal_ref, param_ref, grad_ref, vel_ref, out_ref):
    momentum = scal_ref[0]  # f32 scalar from SMEM
    lr = scal_ref[1]        # f32 scalar from SMEM
    # velocity' = momentum * velocity + grad ; param' = param - lr * velocity'
    # (computed in f32 when inputs are low precision; cast back on store).
    v_new = momentum * vel_ref[...] + grad_ref[...]
    out_ref[...] = (param_ref[...] - lr * v_new).astype(out_ref.dtype)
    # TODO(synk): the PyTorch reference only returns param; a real optimizer
    # should also persist v_new via a second output aliased to velocity
    # (+4 B/elem in the same pass vs. 36 B/elem for a separate pass).


# --------------------------------------------------------------------------- #
# Tiling policy
# --------------------------------------------------------------------------- #
def _choose_block_rows(R, W, itemsize, num_tcs, vmem_budget):
    """Rows per tile.  Resident bytes = 8 * block_rows * W * itemsize
    (3 inputs + 1 output, each double-buffered); block_rows is kept a multiple
    of the dtype's sublane packing so the padded footprint equals the logical
    one and stores stay unmasked."""
    sub = max(1, 32 // itemsize)          # 8 rows f32, 16 bf16, 32 int8/fp8
    per_row = 8 * W * itemsize            # bytes resident per tile row
    rows = max(sub, vmem_budget // per_row)

    if rows >= R:
        rows = R
        # Whole tensor fits in one tile: only split when a second TensorCore
        # can actually pick up the other half (v7x / megacore).
        if num_tcs >= 2 and R >= 2 * sub:
            rows = min(R, _round_up(pl.cdiv(R, 2), sub))
        return rows

    rows = max(sub, (rows // sub) * sub)  # dtype-aware sublane alignment
    rows = min(rows, R)

    if num_tcs >= 2:
        steps = pl.cdiv(R, rows)
        if steps % 2 == 1:                # keep both TensorCores evenly loaded
            cand = min(R, max(sub, _round_up(pl.cdiv(R, steps + 1), sub)))
            if pl.cdiv(R, cand) % 2 == 0:
                rows = cand
    return rows


# --------------------------------------------------------------------------- #
# pallas_call wrapper
# --------------------------------------------------------------------------- #
def sgd_momentum_update(param2d, grad2d, vel2d, scalars):
    """param2d/grad2d/vel2d: (R, W) arrays with W % 128 == 0; scalars: (2,) f32."""
    assert param2d.shape == grad2d.shape == vel2d.shape and param2d.ndim == 2
    R, W = param2d.shape
    vmem_cap = _vmem_capacity_bytes()
    num_tcs = _num_tensorcores()
    block_rows = _choose_block_rows(
        R, W, param2d.dtype.itemsize, num_tcs, vmem_budget=vmem_cap // 2
    )
    grid = (pl.cdiv(R, block_rows),)

    tile = pl.BlockSpec((block_rows, W), lambda i: (i, 0))
    smem = pl.BlockSpec(memory_space=pltpu.MemorySpace.SMEM)

    return pl.pallas_call(
        _sgd_kernel,
        out_shape=jax.ShapeDtypeStruct((R, W), param2d.dtype),
        grid_spec=pltpu.PrefetchScalarGridSpec(
            num_scalar_prefetch=0,
            grid=grid,
            in_specs=[smem, tile, tile, tile],
            out_specs=tile,
        ),
        # param (call-arg index 1, after the SMEM scalars) aliases output 0.
        input_output_aliases={1: 0},
        compiler_params=pltpu.CompilerParams(
            dimension_semantics=("parallel",),
            vmem_limit_bytes=(vmem_cap * 3) // 4,
        ),
    )(scalars, param2d, grad2d, vel2d)


def _pick_width(n, itemsize):
    """Widest lane-dense width W (multiple of 128) keeping R >= sublane packing,
    preferring widths that divide n (no padding copy in the wrapper)."""
    sub = max(1, 32 // itemsize)
    cands = [w for w in (4096, 2048, 1024, 512, 256, 128) if n >= sub * w]
    if not cands:
        return 128
    for w in cands:
        if n % w == 0:
            return w
    return cands[0]


def model_forward(param, grad, velocity, *, momentum=0.9, lr=0.01):
    """Matches Model.forward: returns the updated param (same shape/dtype)."""
    orig_shape = param.shape
    n = param.size
    W = _pick_width(n, param.dtype.itemsize)
    n_pad = _round_up(n, W)
    R = n_pad // W

    def as_slab(x):
        flat = x.reshape(-1)
        if n_pad != n:
            flat = jnp.pad(flat, (0, n_pad - n))
        return flat.reshape(R, W)

    scalars = jnp.array([momentum, lr], dtype=jnp.float32)
    out = sgd_momentum_update(as_slab(param), as_slab(grad), as_slab(velocity), scalars)
    out = out.reshape(-1)
    if n_pad != n:
        out = out[:n]
    return out.reshape(orig_shape)


# In-place optimizer step: donating `param` at the jit boundary lets XLA honor
# the kernel's input_output_aliases (true in-place HBM update, no extra copy).
@functools.partial(jax.jit, donate_argnums=(0,))
def sgd_step(param, grad, velocity, momentum, lr):
    return model_forward(param, grad, velocity, momentum=momentum, lr=lr)


if __name__ == "__main__":
    warnings.filterwarnings("ignore", message=".*donated.*")  # best-effort donation
    key = jax.random.PRNGKey(0)
    momentum, lr = 0.9, 0.01

    def reference(p, g, v):
        return p - lr * (momentum * v + g)

    # Small weight-like cases: first two fit one tile, the second exercises
    # wide-slab tiling / 2-TC split on v7x, the last exercises the padding path
    # (n % 128 != 0).
    for shape in [(32, 128), (256, 1024), (7, 93)]:
        k1, k2, k3 = jax.random.split(
            jax.random.fold_in(key, shape[0] * 131 + shape[1]), 3
        )
        param = jax.random.normal(k1, shape, dtype=jnp.float32)
        grad = jax.random.normal(k2, shape, dtype=jnp.float32)
        velocity = jax.random.normal(k3, shape, dtype=jnp.float32)

        expected = reference(param, grad, velocity)

        out = model_forward(param, grad, velocity, momentum=momentum, lr=lr)
        out = jax.block_until_ready(out)
        assert out.shape == shape and out.dtype == param.dtype
        assert jnp.allclose(out, expected, atol=1e-6, rtol=1e-6)

        # Donated / jitted in-place path (param is consumed by this call).
        out2 = jax.block_until_ready(sgd_step(param, grad, velocity, momentum, lr))
        assert jnp.allclose(out2, expected, atol=1e-6, rtol=1e-6)

    print("KERNEL_OK")
</pallas_src>

<mosaic_0001>
module attributes {stable_mosaic.version = 11 : i64} {
  func.func @_sgd_kernel(%arg0: i32, %arg1: memref<2xf32, #tpu.memory_space<smem>>, %arg2: memref<8x512xf32, #tpu.memory_space<vmem>>, %arg3: memref<8x512xf32, #tpu.memory_space<vmem>>, %arg4: memref<8x512xf32, #tpu.memory_space<vmem>>, %arg5: memref<8x512xf32, #tpu.memory_space<vmem>>) attributes {dimension_semantics = [#tpu.dimension_semantics<parallel>], iteration_bounds = array<i64: 1>, scalar_prefetch = 0 : i64, scratch_operands = 0 : i64, tpu.core_type = #tpu.core_type<tc>, window_params = [{transform_indices = @transform_0, window_bounds = array<i64: 2>}, {transform_indices = @transform_1, window_bounds = array<i64: 8, 512>}, {transform_indices = @transform_2, window_bounds = array<i64: 8, 512>}, {transform_indices = @transform_3, window_bounds = array<i64: 8, 512>}, {transform_indices = @transform_4, window_bounds = array<i64: 8, 512>}]} {
    %c0 = arith.constant 0 : index
    %0 = memref.load %arg1[%c0] : memref<2xf32, #tpu.memory_space<smem>>
    %c1 = arith.constant 1 : index
    %1 = memref.load %arg1[%c1] : memref<2xf32, #tpu.memory_space<smem>>
    %c0_0 = arith.constant 0 : index
    %c0_1 = arith.constant 0 : index
    %2 = vector.load %arg4[%c0_0, %c0_1] : memref<8x512xf32, #tpu.memory_space<vmem>>, vector<8x512xf32>
    %3 = vector.broadcast %0 : f32 to vector<8x512xf32>
    %4 = arith.mulf %3, %2 : vector<8x512xf32>
    %c0_2 = arith.constant 0 : index
    %c0_3 = arith.constant 0 : index
    %5 = vector.load %arg3[%c0_2, %c0_3] : memref<8x512xf32, #tpu.memory_space<vmem>>, vector<8x512xf32>
    %6 = arith.addf %4, %5 : vector<8x512xf32>
    %c0_4 = arith.constant 0 : index
    %c0_5 = arith.constant 0 : index
    %7 = vector.load %arg2[%c0_4, %c0_5] : memref<8x512xf32, #tpu.memory_space<vmem>>, vector<8x512xf32>
    %8 = vector.broadcast %1 : f32 to vector<8x512xf32>
    %9 = arith.mulf %8, %6 : vector<8x512xf32>
    %10 = arith.subf %7, %9 : vector<8x512xf32>
    %c0_6 = arith.constant 0 : index
    %c0_7 = arith.constant 0 : index
    %11 = vector.load %arg5[%c0_6, %c0_7] : memref<8x512xf32, #tpu.memory_space<vmem>>, vector<8x512xf32>
    tpu.vector_store %arg5[%c0_6, %c0_7], %10 {strides = array<i32>} : memref<8x512xf32, #tpu.memory_space<vmem>>, vector<8x512xf32>,
    return
  }
  func.func @transform_0(%arg0: i32) -> i32 {
    %c0_i32 = arith.constant 0 : i32
    %c0_i32_0 = arith.constant 0 : i32
    return %c0_i32 : i32
  }
  func.func @transform_1(%arg0: i32) -> (i32, i32) {
    %c0_i32 = arith.constant 0 : i32
    %c0_i32_0 = arith.constant 0 : i32
    return %arg0, %c0_i32 : i32, i32
  }
  func.func @transform_2(%arg0: i32) -> (i32, i32) {
    %c0_i32 = arith.constant 0 : i32
    %c0_i32_0 = arith.constant 0 : i32
    return %arg0, %c0_i32 : i32, i32
  }
  func.func @transform_3(%arg0: i32) -> (i32, i32) {
    %c0_i32 = arith.constant 0 : i32
    %c0_i32_0 = arith.constant 0 : i32
    return %arg0, %c0_i32 : i32, i32
  }
  func.func @transform_4(%arg0: i32) -> (i32, i32) {
    %c0_i32 = arith.constant 0 : i32
    %c0_i32_0 = arith.constant 0 : i32
    return %arg0, %c0_i32 : i32, i32
  }
}

</mosaic_0001>

<bundles_post_ra>
// kernel: tpu_custom_call.1
= control target key start
LH: loop header
LB: loop body
LE: loop exit
PB: predicated region body
PF: predicated region fallthrough
CT: control target
= control target key end

     0   :  { %9 = vsyncpa [#allocation5], 0  ;;  %s230_s0 = inlined_call_operand.vmem [shape: f32[2], index: 0, kind: input, shape index: {}]   ;;  %s231_s1 = inlined_call_operand.hbm [shape: f32[8,512], index: 1, kind: input, shape index: {}, may-alias: {1,4}]   ;;  %s232_s2 = inlined_call_operand.vmem [shape: f32[8,512], index: 2, kind: input, shape index: {}]   ;;  %s233_s3 = inlined_call_operand.vmem [shape: f32[8,512], index: 3, kind: input, shape index: {}]   ;;  %s234_s4 = inlined_call_operand.hbm [shape: f32[8,512], index: 4, kind: output, shape index: {}, may-alias: {1,4}]  }
   0x1   :  { %10 = vsyncpa [#allocation3], 0 }
   0x2   :  { %11 = vsyncpa [#allocation4], 0  ;;  %s17_s17 = sshll.u32 %s230_s0, 4  ;;  %s26_s20 = sshll.u32 %s231_s1, 4  ;;  %s18_s17 = int_to_ptr.vmem [resolvable:$true] %s17_s17  ;;  %s27_s20 = int_to_ptr.hbm [resolvable:$true] %s26_s20 }
   0x3   :  { %s169_s21 = smov [#allocation2]   ;;  %s170_s22 = smov [#allocation6]  }
   0x4   :  { %20 = dma.vmem_to_smem %s18_s17, 16, %s169_s21, [#allocation5]  }
   0x5   :  { %s28_s23 = sshll.u32 %s170_s22, 4  ;;  %s29_s23 = int_to_ptr.vmem [resolvable:$true] %s28_s23 }
   0x6   :  { %31 = dma.hbm_to_vmem [thread:$0]  %s27_s20, 512, %s29_s23, [#allocation3]  }
   0x7   :  { %163 = dma.done.wait [#allocation5], 16  }
   0x8   :  { %164 = vsyncadd [#allocation5], 4294967280 }
   0x9   :  { %165 = dma.done.wait [#allocation3], 512  }
   0xa   :  { %166 = vsyncadd [#allocation3], 4294966784 }
   0xb   :  { %44 = sfence }
   0xc   :  { %s45_s24 = sld [smem:[#allocation2]]  ;;  %v47_v0 = vld [vmem:[%s233_s3] sm:$0xff]  ;;  %v48_v1 = vld [vmem:[%s233_s3 + $0x8] sm:$0xff]  ;;  %v49_v2 = vld [vmem:[%s233_s3 + $0x10] sm:$0xff]  ;;  %s88_s16 = sshll.u32 %s234_s4, 4  ;;  %s89_s16 = int_to_ptr.hbm [resolvable:$true] %s88_s16 }
   0xd   :  { %s99_s25 = sld [smem:[#allocation2 + $0x1]]  ;;  %v50_v3 = vld [vmem:[%s233_s3 + $0x18] sm:$0xff]  ;;  %v56_v5 = vld [vmem:[%s232_s2] sm:$0xff]  ;;  %v57_v6 = vld [vmem:[%s232_s2 + $0x8] sm:$0xff]  ;;  %s171_s3 = smov [#allocation7]  }
   0xe   :  { %v58_v7 = vld [vmem:[%s232_s2 + $0x10] sm:$0xff]  ;;  %v59_v11 = vld [vmem:[%s232_s2 + $0x18] sm:$0xff]  ;;  %v64_v17 = vld [vmem:[#allocation6] sm:$0xff]  ;;  %s86_s14 = sshll.u32 %s171_s3, 4  ;;  %s87_s14 = int_to_ptr.vmem [resolvable:$true] %s86_s14 }
   0xf   :  { %v65_v18 = vld [vmem:[#allocation6 + $0x8] sm:$0xff]  ;;  %v66_v19 = vld [vmem:[#allocation6 + $0x10] sm:$0xff]  ;;  %v67_v24 = vld [vmem:[#allocation6 + $0x18] sm:$0xff] }
  0x12   :  { %v51_v4 = vstv %s45_s24 }
  0x13   :  { %v52_v8 = vmul.f32 %v51_v4, %v47_v0  ;;  %v53_v9 = vmul.f32 %v51_v4, %v48_v1  ;;  %v54_v10 = vmul.f32 %v51_v4, %v49_v2  ;;  %v68_v12 = vstv %s99_s25 }
  0x14   :  { %v55_v13 = vmul.f32 %v51_v4, %v50_v3 }
  0x15   :  { %v60_v14 = vadd.f32 %v56_v5, %v52_v8  ;;  %v61_v15 = vadd.f32 %v57_v6, %v53_v9  ;;  %v62_v16 = vadd.f32 %v58_v7, %v54_v10 }
  0x16   :  { %v63_v20 = vadd.f32 %v59_v11, %v55_v13 }
  0x17   :  { %v69_v21 = vmul.f32 %v68_v12, %v60_v14  ;;  %v70_v22 = vmul.f32 %v68_v12, %v61_v15  ;;  %v71_v23 = vmul.f32 %v68_v12, %v62_v16 }
  0x18   :  { %v72_v25 = vmul.f32 %v68_v12, %v63_v20 }
  0x19   :  { %v73_v26 = vsub.f32 %v64_v17, %v69_v21  ;;  %v74_v27 = vsub.f32 %v65_v18, %v70_v22  ;;  %v75_v28 = vsub.f32 %v66_v19, %v71_v23 }
  0x1a   :  { %v76_v29 = vsub.f32 %v67_v24, %v72_v25 }
  0x1b   :  { %77 = vst [vmem:[#allocation7] sm:$0xff] %v73_v26 }
  0x1c   :  { %78 = vst [vmem:[#allocation7 + $0x8] sm:$0xff] %v74_v27 }
  0x1d   :  { %79 = vst [vmem:[#allocation7 + $0x10] sm:$0xff] %v75_v28 }
  0x1e   :  { %80 = vst [vmem:[#allocation7 + $0x18] sm:$0xff] %v76_v29 }
  0x1f   :  { %91 = dma.vmem_to_hbm [thread:$0]  %s87_s14, 512, %s89_s16, [#allocation4]  }
  0x20   :  { %167 = dma.done.wait [#allocation4], 512  }
  0x21   :  { %168 = vsyncadd [#allocation4], 4294966784 }
  0x22   :  { %96 = vsyncpa [#allocation3], 1 }
  0x23   :  { %97 = vsyncpa [#allocation4], 1 }
  0x24   :  { %98 = vsyncpa [#allocation5], 1 }

</bundles_post_ra>
